<compile_context>
chip_gen: v6e
topology: v6e:2x2x1
jax: 0.10.0
libtpu: 0.0.40
codegen_flags: <defaults>
</compile_context>

<pallas_src>
import functools

import jax
import jax.numpy as jnp
from jax.experimental import pallas as pl
from jax.experimental.pallas import tpu as pltpu

_LANE = 128     # lane width (last dim)
_SUBLANE = 8    # sublane width (second-to-last dim)


def _round_up(x, m):
    return ((x + m - 1) // m) * m


def _make_fused_mlp_kernel(num_layers, use_bf16_matmul=False):
    """Kernel body: whole MLP in one pass, everything resident in VMEM.

    refs:
      x_ref : (B_pad, Dp)            padded input
      w_ref : (L, Dp, Dp)            stacked zero-padded weights (in, out)
      b_ref : (L, 1, Dp)             stacked zero-padded biases
      z_ref : (L, B_pad, Dp)         stacked pre-activations (output)
      a_ref : (L, B_pad, Dp)         stacked activations (output)
    """

    def kernel(x_ref, w_ref, b_ref, z_ref, a_ref):
        a = x_ref[...]
        for l in range(num_layers):                  # static unroll
            w = w_ref[l]                             # (Dp, Dp)
            b = b_ref[l]                             # (1, Dp), broadcast once
            if use_bf16_matmul:
                # v6e/v7x MXU is bf16-native; accumulate in f32.
                z = jnp.dot(a.astype(jnp.bfloat16), w.astype(jnp.bfloat16),
                            preferred_element_type=jnp.float32) + b
            else:
                z = jnp.dot(a, w, preferred_element_type=jnp.float32) + b
            z_ref[l] = z                             # Z_l
            if l < num_layers - 1:
                a = jnp.maximum(z, 0.0)              # ReLU (VPU)
            else:
                a = jax.nn.sigmoid(z)                # sigmoid -> EUP exp path
            a_ref[l] = a                             # A_l
    return kernel


def pack_params(H, params):
    """Stack + zero-pad all weights/biases once, outside the hot path."""
    L = len(H) - 1
    Dp = _round_up(max(H), _LANE)
    w_stacked = jnp.zeros((L, Dp, Dp), jnp.float32)
    b_stacked = jnp.zeros((L, 1, Dp), jnp.float32)
    for l in range(1, L + 1):
        w, b = params["l" + str(l)]                  # w: (in, out)
        w_stacked = w_stacked.at[l - 1, : H[l - 1], : H[l]].set(w)
        b_stacked = b_stacked.at[l - 1, 0, : H[l]].set(b)
    return w_stacked, b_stacked


def pad_input(X, H):
    """Pad X to (B_pad, Dp) once, outside the hot path."""
    B, D0 = X.shape
    B_pad = _round_up(B, _SUBLANE)
    Dp = _round_up(max(H), _LANE)
    return jnp.zeros((B_pad, Dp), jnp.float32).at[:B, :D0].set(X)


@functools.partial(jax.jit, static_argnames=("use_bf16_matmul",))
def fused_mlp_forward_padded(x_p, w_stacked, b_stacked, use_bf16_matmul=False):
    """Hot path: padded input + packed params -> padded stacked (Z, A)."""
    L, Dp, _ = w_stacked.shape
    B_pad = x_p.shape[0]

    # Whole arrays resident in VMEM; single invocation, no grid (per review:
    # grid-step overhead would dominate at these shapes).
    vmem = pl.BlockSpec(memory_space=pltpu.MemorySpace.VMEM)

    z_stacked, a_stacked = pl.pallas_call(
        _make_fused_mlp_kernel(L, use_bf16_matmul),
        out_shape=(
            jax.ShapeDtypeStruct((L, B_pad, Dp), jnp.float32),
            jax.ShapeDtypeStruct((L, B_pad, Dp), jnp.float32),
        ),
        in_specs=[vmem, vmem, vmem],
        out_specs=(vmem, vmem),
    )(x_p, w_stacked, b_stacked)
    return z_stacked, a_stacked


def network_forward(X, H, w_stacked, b_stacked, use_bf16_matmul=False):
    """Mirrors Network.forward(X, H): returns (activations, inter_values).

    NOTE: padded regions of the stacked outputs are NOT zero (batch-padded
    rows hold the broadcast bias; feature-padded columns of A_L are
    sigmoid(0)=0.5).  They are sliced away here, at the point of consumption.
    """
    L = len(H) - 1
    B = X.shape[0]
    x_p = pad_input(X, H)
    z_stacked, a_stacked = fused_mlp_forward_padded(
        x_p, w_stacked, b_stacked, use_bf16_matmul=use_bf16_matmul)

    activations = {"A0": X}
    inter_values = {}
    for l in range(1, L + 1):
        inter_values["Z" + str(l)] = z_stacked[l - 1, :B, : H[l]]
        activations["A" + str(l)] = a_stacked[l - 1, :B, : H[l]]
    return activations, inter_values


def init_params(H, key):
    """Deterministic init matching nn.Linear(H[l-1], H[l]).

    PyTorch weight is (out, in); we store its transpose (in, out) so the
    kernel computes Z = X @ W + b (== x @ weight.T + bias).
    """
    params = {}
    for l in range(1, len(H)):
        key, wk, bk = jax.random.split(key, 3)
        fan_in = H[l - 1]
        bound = 1.0 / jnp.sqrt(fan_in)
        w = jax.random.uniform(
            wk, (H[l - 1], H[l]), minval=-bound, maxval=bound, dtype=jnp.float32)
        b = jax.random.uniform(
            bk, (H[l],), minval=-bound, maxval=bound, dtype=jnp.float32)
        params["l" + str(l)] = (w, b)
    return params


if __name__ == "__main__":
    # Small shapes consistent with the MLP: batch=8, H = [16, 32, 32, 4]
    H = (16, 32, 32, 4)
    batch = 8

    key = jax.random.PRNGKey(0)
    key, xk = jax.random.split(key)
    X = jax.random.normal(xk, (batch, H[0]), dtype=jnp.float32)

    params = init_params(H, key)
    w_stacked, b_stacked = pack_params(H, params)   # packed once, off hot path

    activations, inter_values = network_forward(X, H, w_stacked, b_stacked)
    jax.block_until_ready(activations["A" + str(len(H) - 1)])

    # Reference check against plain JAX (same math as PyTorch forward).
    a_ref = X
    for l in range(1, len(H)):
        w, b = params["l" + str(l)]
        z_ref = a_ref @ w + b
        if l < len(H) - 1:
            a_ref = jnp.maximum(z_ref, 0.0)
        else:
            a_ref = jax.nn.sigmoid(z_ref)
        assert jnp.allclose(inter_values["Z" + str(l)], z_ref, atol=1e-5), f"Z{l} mismatch"
        assert jnp.allclose(activations["A" + str(l)], a_ref, atol=1e-5), f"A{l} mismatch"

    print("KERNEL_OK")
</pallas_src>

<mosaic_0001>
module attributes {stable_mosaic.version = 11 : i64} {
  func.func @kernel(%arg0: memref<8x128xf32, #tpu.memory_space<vmem>>, %arg1: memref<3x128x128xf32, #tpu.memory_space<vmem>>, %arg2: memref<3x1x128xf32, #tpu.memory_space<vmem>>, %arg3: memref<3x8x128xf32, #tpu.memory_space<vmem>>, %arg4: memref<3x8x128xf32, #tpu.memory_space<vmem>>) attributes {dimension_semantics = [], scalar_prefetch = 0 : i64, scratch_operands = 0 : i64, tpu.core_type = #tpu.core_type<tc>} {
    %c0 = arith.constant 0 : index
    %c0_0 = arith.constant 0 : index
    %0 = vector.load %arg0[%c0, %c0_0] : memref<8x128xf32, #tpu.memory_space<vmem>>, vector<8x128xf32>
    %c0_1 = arith.constant 0 : index
    %c0_2 = arith.constant 0 : index
    %c0_3 = arith.constant 0 : index
    %1 = vector.load %arg1[%c0_1, %c0_2, %c0_3] : memref<3x128x128xf32, #tpu.memory_space<vmem>>, vector<1x128x128xf32>
    %2 = vector.shape_cast %1 : vector<1x128x128xf32> to vector<128x128xf32>
    %c0_4 = arith.constant 0 : index
    %c0_5 = arith.constant 0 : index
    %c0_6 = arith.constant 0 : index
    %3 = vector.load %arg2[%c0_4, %c0_5, %c0_6] : memref<3x1x128xf32, #tpu.memory_space<vmem>>, vector<1x1x128xf32>
    %4 = vector.shape_cast %3 : vector<1x1x128xf32> to vector<1x128xf32>
    %cst = arith.constant dense<0.000000e+00> : vector<8x128xf32>
    %5 = tpu.matmul %0, %2, %cst {dimension_numbers = #tpu.dot_dimension_numbers<[1], [0], [0], [1], [0, 0, 1, 1], [], []>} : vector<8x128xf32>, vector<128x128xf32>, vector<8x128xf32> -> vector<8x128xf32>
    %6 = vector.broadcast %4 : vector<1x128xf32> to vector<8x128xf32>
    %7 = arith.addf %5, %6 : vector<8x128xf32>
    %c0_7 = arith.constant 0 : index
    %c0_8 = arith.constant 0 : index
    %c0_9 = arith.constant 0 : index
    %8 = vector.load %arg3[%c0_7, %c0_8, %c0_9] : memref<3x8x128xf32, #tpu.memory_space<vmem>>, vector<1x8x128xf32>
    %9 = vector.shape_cast %8 : vector<1x8x128xf32> to vector<8x128xf32>
    %10 = vector.shape_cast %7 : vector<8x128xf32> to vector<1x8x128xf32>
    tpu.vector_store %arg3[%c0_7, %c0_8, %c0_9], %10 {strides = array<i32>} : memref<3x8x128xf32, #tpu.memory_space<vmem>>, vector<1x8x128xf32>,
    %cst_10 = arith.constant 0.000000e+00 : f32
    %11 = vector.broadcast %cst_10 : f32 to vector<8x128xf32>
    %12 = arith.maximumf %7, %11 : vector<8x128xf32>
    %c0_11 = arith.constant 0 : index
    %c0_12 = arith.constant 0 : index
    %c0_13 = arith.constant 0 : index
    %13 = vector.load %arg4[%c0_11, %c0_12, %c0_13] : memref<3x8x128xf32, #tpu.memory_space<vmem>>, vector<1x8x128xf32>
    %14 = vector.shape_cast %13 : vector<1x8x128xf32> to vector<8x128xf32>
    %15 = vector.shape_cast %12 : vector<8x128xf32> to vector<1x8x128xf32>
    tpu.vector_store %arg4[%c0_11, %c0_12, %c0_13], %15 {strides = array<i32>} : memref<3x8x128xf32, #tpu.memory_space<vmem>>, vector<1x8x128xf32>,
    %c1 = arith.constant 1 : index
    %c0_14 = arith.constant 0 : index
    %c0_15 = arith.constant 0 : index
    %16 = vector.load %arg1[%c1, %c0_14, %c0_15] : memref<3x128x128xf32, #tpu.memory_space<vmem>>, vector<1x128x128xf32>
    %17 = vector.shape_cast %16 : vector<1x128x128xf32> to vector<128x128xf32>
    %c1_16 = arith.constant 1 : index
    %c0_17 = arith.constant 0 : index
    %c0_18 = arith.constant 0 : index
    %18 = vector.load %arg2[%c1_16, %c0_17, %c0_18] : memref<3x1x128xf32, #tpu.memory_space<vmem>>, vector<1x1x128xf32>
    %19 = vector.shape_cast %18 : vector<1x1x128xf32> to vector<1x128xf32>
    %cst_19 = arith.constant dense<0.000000e+00> : vector<8x128xf32>
    %20 = tpu.matmul %12, %17, %cst_19 {dimension_numbers = #tpu.dot_dimension_numbers<[1], [0], [0], [1], [0, 0, 1, 1], [], []>} : vector<8x128xf32>, vector<128x128xf32>, vector<8x128xf32> -> vector<8x128xf32>
    %21 = vector.broadcast %19 : vector<1x128xf32> to vector<8x128xf32>
    %22 = arith.addf %20, %21 : vector<8x128xf32>
    %c1_20 = arith.constant 1 : index
    %c0_21 = arith.constant 0 : index
    %c0_22 = arith.constant 0 : index
    %23 = vector.load %arg3[%c1_20, %c0_21, %c0_22] : memref<3x8x128xf32, #tpu.memory_space<vmem>>, vector<1x8x128xf32>
    %24 = vector.shape_cast %23 : vector<1x8x128xf32> to vector<8x128xf32>
    %25 = vector.shape_cast %22 : vector<8x128xf32> to vector<1x8x128xf32>
    tpu.vector_store %arg3[%c1_20, %c0_21, %c0_22], %25 {strides = array<i32>} : memref<3x8x128xf32, #tpu.memory_space<vmem>>, vector<1x8x128xf32>,
    %cst_23 = arith.constant 0.000000e+00 : f32
    %26 = vector.broadcast %cst_23 : f32 to vector<8x128xf32>
    %27 = arith.maximumf %22, %26 : vector<8x128xf32>
    %c1_24 = arith.constant 1 : index
    %c0_25 = arith.constant 0 : index
    %c0_26 = arith.constant 0 : index
    %28 = vector.load %arg4[%c1_24, %c0_25, %c0_26] : memref<3x8x128xf32, #tpu.memory_space<vmem>>, vector<1x8x128xf32>
    %29 = vector.shape_cast %28 : vector<1x8x128xf32> to vector<8x128xf32>
    %30 = vector.shape_cast %27 : vector<8x128xf32> to vector<1x8x128xf32>
    tpu.vector_store %arg4[%c1_24, %c0_25, %c0_26], %30 {strides = array<i32>} : memref<3x8x128xf32, #tpu.memory_space<vmem>>, vector<1x8x128xf32>,
    %c2 = arith.constant 2 : index
    %c0_27 = arith.constant 0 : index
    %c0_28 = arith.constant 0 : index
    %31 = vector.load %arg1[%c2, %c0_27, %c0_28] : memref<3x128x128xf32, #tpu.memory_space<vmem>>, vector<1x128x128xf32>
    %32 = vector.shape_cast %31 : vector<1x128x128xf32> to vector<128x128xf32>
    %c2_29 = arith.constant 2 : index
    %c0_30 = arith.constant 0 : index
    %c0_31 = arith.constant 0 : index
    %33 = vector.load %arg2[%c2_29, %c0_30, %c0_31] : memref<3x1x128xf32, #tpu.memory_space<vmem>>, vector<1x1x128xf32>
    %34 = vector.shape_cast %33 : vector<1x1x128xf32> to vector<1x128xf32>
    %cst_32 = arith.constant dense<0.000000e+00> : vector<8x128xf32>
    %35 = tpu.matmul %27, %32, %cst_32 {dimension_numbers = #tpu.dot_dimension_numbers<[1], [0], [0], [1], [0, 0, 1, 1], [], []>} : vector<8x128xf32>, vector<128x128xf32>, vector<8x128xf32> -> vector<8x128xf32>
    %36 = vector.broadcast %34 : vector<1x128xf32> to vector<8x128xf32>
    %37 = arith.addf %35, %36 : vector<8x128xf32>
    %c2_33 = arith.constant 2 : index
    %c0_34 = arith.constant 0 : index
    %c0_35 = arith.constant 0 : index
    %38 = vector.load %arg3[%c2_33, %c0_34, %c0_35] : memref<3x8x128xf32, #tpu.memory_space<vmem>>, vector<1x8x128xf32>
    %39 = vector.shape_cast %38 : vector<1x8x128xf32> to vector<8x128xf32>
    %40 = vector.shape_cast %37 : vector<8x128xf32> to vector<1x8x128xf32>
    tpu.vector_store %arg3[%c2_33, %c0_34, %c0_35], %40 {strides = array<i32>} : memref<3x8x128xf32, #tpu.memory_space<vmem>>, vector<1x8x128xf32>,
    %41 = arith.negf %37 : vector<8x128xf32>
    %42 = math.exp %41 : vector<8x128xf32>
    %cst_36 = arith.constant 1.000000e+00 : f32
    %43 = vector.broadcast %cst_36 : f32 to vector<8x128xf32>
    %44 = arith.addf %43, %42 : vector<8x128xf32>
    %45 = arith.divf %43, %44 : vector<8x128xf32>
    %c2_37 = arith.constant 2 : index
    %c0_38 = arith.constant 0 : index
    %c0_39 = arith.constant 0 : index
    %46 = vector.load %arg4[%c2_37, %c0_38, %c0_39] : memref<3x8x128xf32, #tpu.memory_space<vmem>>, vector<1x8x128xf32>
    %47 = vector.shape_cast %46 : vector<1x8x128xf32> to vector<8x128xf32>
    %48 = vector.shape_cast %45 : vector<8x128xf32> to vector<1x8x128xf32>
    tpu.vector_store %arg4[%c2_37, %c0_38, %c0_39], %48 {strides = array<i32>} : memref<3x8x128xf32, #tpu.memory_space<vmem>>, vector<1x8x128xf32>,
    return
  }
}

</mosaic_0001>

<bundles_post_ra>
// kernel: fused_mlp_forward_padded.1
= control target key start
LH: loop header
LB: loop body
LE: loop exit
PB: predicated region body
PF: predicated region fallthrough
CT: control target
= control target key end

     0   :  { %10 = vsyncpa [#allocation3], 0  ;;  %s759_s0 = inlined_call_operand.hbm [shape: f32[8,128], index: 0, kind: input, shape index: {}]   ;;  %s760_s1 = inlined_call_operand.hbm [shape: f32[3,128,128], index: 1, kind: input, shape index: {}]   ;;  %s761_s2 = inlined_call_operand.vmem [shape: f32[3,1,128], index: 2, kind: input, shape index: {}]   ;;  %s762_s3 = inlined_call_operand.hbm [shape: f32[3,8,128], index: 3, kind: output, shape index: {0}]   ;;  %s763_s4 = inlined_call_operand.hbm [shape: f32[3,8,128], index: 4, kind: output, shape index: {1}]  }
   0x1   :  { %11 = vsyncpa [#allocation6], 0 }
   0x2   :  { %12 = vsyncpa [#allocation4], 0 }
   0x3   :  { %13 = vsyncpa [#allocation9], 0  ;;  %s642_s15 = smov [#allocation2]   ;;  %s643_s17 = smov [#allocation5]  }
   0x4   :  { %s20_s16 = sshll.u32 %s642_s15, 4  ;;  %s29_s18 = sshll.u32 %s643_s17, 4  ;;  %s21_s16 = int_to_ptr.vmem [resolvable:$true] %s20_s16  ;;  %s30_s18 = int_to_ptr.vmem [resolvable:$true] %s29_s18 }
   0x5   :  { %s562_s19 = scalar_lea.vmem %s21_s16, 128  ;;  %p567_p1 = scmp.lt.s32.totalorder %s21_s16, %s21_s16 }
   0x6   :  { %p563_p0 = scmp.ne.s32.totalorder %s21_s16, %s562_s19  ;;  %p568_p2 = scmp.lt.s32.totalorder %s562_s19, %s562_s19 }
   0x8   :  { %p569_p3 = por %p568_p2, %p567_p1 }
   0xa   :  { %p570_p4 = pnand %p569_p3, %p563_p0 }
   0xc   :  { %573 = shalt.err (!%p570_p4)
}
   0xd   :  { %23 = dma.hbm_to_vmem [thread:$0]  %s759_s0, 128, %s21_s16, [#allocation3]  }
   0xe   :  { %s582_s22 = scalar_lea.vmem %s30_s18, 6144  ;;  %p587_p6 = scmp.lt.s32.totalorder %s30_s18, %s30_s18 }
   0xf   :  { %p583_p5 = scmp.ne.s32.totalorder %s30_s18, %s582_s22  ;;  %p588_p7 = scmp.lt.s32.totalorder %s582_s22, %s582_s22 }
  0x11   :  { %p589_p8 = por %p588_p7, %p587_p6 }
  0x13   :  { %p590_p9 = pnand %p589_p8, %p583_p5 }
  0x15   :  { %593 = shalt.err (!%p590_p9)
}
  0x16   :  { %s644_s23 = smov 128   ;;  %s645_s24 = smov 8  }
  0x17   :  { %35 = dma.hbm_to_vmem [thread:$0]  %s760_s1, 6144, %s30_s18, [#allocation6], %s644_s23, %s644_s23, %s645_s24  }
  0x18   :  { %634 = dma.done.wait [#allocation3], 128  }
  0x19   :  { %635 = vsyncadd [#allocation3], 4294967168 }
  0x1a   :  { %636 = dma.done.wait [#allocation6], 6144  }
  0x1b   :  { %637 = vsyncadd [#allocation6], 4294961152  ;;  %v646_v0 = vmov 0.0   ;;  %vm647_vm0 = vmmov 0   ;;  %v60_v1 = vld [vmem:[#allocation5 + $0x78] sm:$0xff]  ;;  %v59_v2 = vld [vmem:[#allocation5 + $0x70] sm:$0xff] }
  0x1c   :  { %437 = vmatprep.subr.mxu0 %v646_v0  ;;  %469 = vmatprep.mubr.msk.f32.mxu0 %vm647_vm0, %v646_v0  ;;  %v58_v3 = vld [vmem:[#allocation5 + $0x68] sm:$0xff]  ;;  %v57_v4 = vld [vmem:[#allocation5 + $0x60] sm:$0xff]  ;;  %v157_v5 = vld [vmem:[#allocation5 + $0xf8] sm:$0xff]  ;;  %s648_s5 = smov [#allocation7]  }
  0x1d   :  { %472 = vmatprep.subr.mxu1 %v646_v0  ;;  %504 = vmatprep.mubr.msk.f32.mxu1 %vm647_vm0, %v646_v0  ;;  %v56_v6 = vld [vmem:[#allocation5 + $0x58] sm:$0xff]  ;;  %v156_v7 = vld [vmem:[#allocation5 + $0xf0] sm:$0xff]  ;;  %v155_v8 = vld [vmem:[#allocation5 + $0xe8] sm:$0xff]  ;;  %s351_s6 = sshll.u32 %s648_s5, 4  ;;  %s352_s6 = int_to_ptr.vmem [resolvable:$true] %s351_s6 }
  0x1e   :  { %438 = vmatpush3.msra.mxu0 %v60_v1  ;;  %473 = vmatpush3.msra.mxu1 %v157_v5  ;;  %v55_v9 = vld [vmem:[#allocation5 + $0x50] sm:$0xff]  ;;  %v154_v10 = vld [vmem:[#allocation5 + $0xe0] sm:$0xff]  ;;  %v54_v11 = vld [vmem:[#allocation5 + $0x48] sm:$0xff]  ;;  %s594_s7 = scalar_lea.vmem %s352_s6, 384  ;;  %p599_p11 = scmp.lt.s32.totalorder %s352_s6, %s352_s6 }
  0x1f   :  { %439 = vmatprep.subr.mxu0 %v646_v0  ;;  %474 = vmatprep.subr.mxu1 %v646_v0  ;;  %v153_v12 = vld [vmem:[#allocation5 + $0xd8] sm:$0xff]  ;;  %v53_v13 = vld [vmem:[#allocation5 + $0x40] sm:$0xff]  ;;  %v152_v14 = vld [vmem:[#allocation5 + $0xd0] sm:$0xff]  ;;  %p595_p10 = scmp.ne.s32.totalorder %s352_s6, %s594_s7  ;;  %p600_p12 = scmp.lt.s32.totalorder %s594_s7, %s594_s7 }
  0x20   :  { %440 = vmatpush3.msra.mxu0 %v59_v2  ;;  %475 = vmatpush3.msra.mxu1 %v156_v7  ;;  %v52_v15 = vld [vmem:[#allocation5 + $0x38] sm:$0xff]  ;;  %v151_v16 = vld [vmem:[#allocation5 + $0xc8] sm:$0xff]  ;;  %v51_v17 = vld [vmem:[#allocation5 + $0x30] sm:$0xff] }
  0x21   :  { %441 = vmatprep.subr.mxu0 %v646_v0  ;;  %476 = vmatprep.subr.mxu1 %v646_v0  ;;  %v150_v18 = vld [vmem:[#allocation5 + $0xc0] sm:$0xff]  ;;  %v50_v19 = vld [vmem:[#allocation5 + $0x28] sm:$0xff]  ;;  %v149_v20 = vld [vmem:[#allocation5 + $0xb8] sm:$0xff]  ;;  %p601_p13 = por %p600_p12, %p599_p11 }
  0x22   :  { %442 = vmatpush3.msra.mxu0 %v58_v3  ;;  %477 = vmatpush3.msra.mxu1 %v155_v8  ;;  %v49_v21 = vld [vmem:[#allocation5 + $0x20] sm:$0xff]  ;;  %v148_v22 = vld [vmem:[#allocation5 + $0xb0] sm:$0xff]  ;;  %v48_v23 = vld [vmem:[#allocation5 + $0x18] sm:$0xff] }
  0x23   :  { %443 = vmatprep.subr.mxu0 %v646_v0  ;;  %478 = vmatprep.subr.mxu1 %v646_v0  ;;  %v147_v24 = vld [vmem:[#allocation5 + $0xa8] sm:$0xff]  ;;  %v47_v25 = vld [vmem:[#allocation5 + $0x10] sm:$0xff]  ;;  %v146_v26 = vld [vmem:[#allocation5 + $0xa0] sm:$0xff]  ;;  %p602_p0 = pnand %p601_p13, %p595_p10 }
  0x24   :  { %444 = vmatpush3.msra.mxu0 %v57_v4  ;;  %479 = vmatpush3.msra.mxu1 %v154_v10  ;;  %v46_v27 = vld [vmem:[#allocation5 + $0x8] sm:$0xff]  ;;  %v145_v28 = vld [vmem:[#allocation5 + $0x98] sm:$0xff]  ;;  %v45_v29 = vld [vmem:[#allocation5] sm:$0xff] }
  0x25   :  { %445 = vmatprep.subr.mxu0 %v646_v0  ;;  %480 = vmatprep.subr.mxu1 %v646_v0  ;;  %v44_v30 = vld [vmem:[#allocation2] sm:$0xff]  ;;  %v144_v31 = vld [vmem:[#allocation5 + $0x90] sm:$0xff]  ;;  %v143_v32 = vld [vmem:[#allocation5 + $0x88] sm:$0xff] }
  0x26   :  { %446 = vmatpush3.msra.mxu0 %v56_v6  ;;  %481 = vmatpush3.msra.mxu1 %v153_v12  ;;  %v142_v33 = vld [vmem:[#allocation5 + $0x80] sm:$0xff]  ;;  %v257_v34 = vld [vmem:[#allocation5 + $0x178] sm:$0xff]  ;;  %v256_v35 = vld [vmem:[#allocation5 + $0x170] sm:$0xff] }
  0x27   :  { %447 = vmatprep.subr.mxu0 %v646_v0  ;;  %482 = vmatprep.subr.mxu1 %v646_v0  ;;  %v255_v36 = vld [vmem:[#allocation5 + $0x168] sm:$0xff]  ;;  %v254_v37 = vld [vmem:[#allocation5 + $0x160] sm:$0xff]  ;;  %v253_v38 = vld [vmem:[#allocation5 + $0x158] sm:$0xff] }
  0x28   :  { %448 = vmatpush3.msra.mxu0 %v55_v9  ;;  %483 = vmatpush3.msra.mxu1 %v152_v14  ;;  %v252_v39 = vld [vmem:[#allocation5 + $0x150] sm:$0xff]  ;;  %v251_v40 = vld [vmem:[#allocation5 + $0x148] sm:$0xff]  ;;  %v250_v41 = vld [vmem:[#allocation5 + $0x140] sm:$0xff] }
  0x29   :  { %449 = vmatprep.subr.mxu0 %v646_v0  ;;  %484 = vmatprep.subr.mxu1 %v646_v0  ;;  %v249_v42 = vld [vmem:[#allocation5 + $0x138] sm:$0xff]  ;;  %v248_v43 = vld [vmem:[#allocation5 + $0x130] sm:$0xff]  ;;  %v247_v44 = vld [vmem:[#allocation5 + $0x128] sm:$0xff] }
  0x2a   :  { %450 = vmatpush3.msra.mxu0 %v54_v11  ;;  %485 = vmatpush3.msra.mxu1 %v151_v16  ;;  %v246_v45 = vld [vmem:[#allocation5 + $0x120] sm:$0xff]  ;;  %v245_v46 = vld [vmem:[#allocation5 + $0x118] sm:$0xff]  ;;  %v244_v52 = vld [vmem:[#allocation5 + $0x110] sm:$0xff] }
  0x2b   :  { %451 = vmatprep.subr.mxu0 %v646_v0  ;;  %486 = vmatprep.subr.mxu1 %v646_v0  ;;  %v380_v47 = vld [vmem:[%s761_s2] ss:$0 sm:$0xff]  ;;  %v243_v53 = vld [vmem:[#allocation5 + $0x108] sm:$0xff]  ;;  %v242_v54 = vld [vmem:[#allocation5 + $0x100] sm:$0xff] }
  0x2c   :  { %452 = vmatpush3.msra.mxu0 %v53_v13  ;;  %487 = vmatpush3.msra.mxu1 %v150_v18  ;;  %v382_v55 = vld [vmem:[%s761_s2 + $0x1] ss:$0 sm:$0xff]  ;;  %v384_v60 = vld [vmem:[%s761_s2 + $0x2] ss:$0 sm:$0xff] }
  0x2d   :  { %453 = vmatprep.subr.mxu0 %v646_v0  ;;  %488 = vmatprep.subr.mxu1 %v646_v0 }
  0x2e   :  { %454 = vmatpush3.msra.mxu0 %v52_v15  ;;  %489 = vmatpush3.msra.mxu1 %v149_v20 }
  0x2f   :  { %455 = vmatprep.subr.mxu0 %v646_v0  ;;  %490 = vmatprep.subr.mxu1 %v646_v0 }
  0x30   :  { %456 = vmatpush3.msra.mxu0 %v51_v17  ;;  %491 = vmatpush3.msra.mxu1 %v148_v22 }
  0x31   :  { %457 = vmatprep.subr.mxu0 %v646_v0  ;;  %492 = vmatprep.subr.mxu1 %v646_v0 }
  0x32   :  { %458 = vmatpush3.msra.mxu0 %v50_v19  ;;  %493 = vmatpush3.msra.mxu1 %v147_v24 }
  0x33   :  { %459 = vmatprep.subr.mxu0 %v646_v0  ;;  %494 = vmatprep.subr.mxu1 %v646_v0 }
  0x34   :  { %460 = vmatpush3.msra.mxu0 %v49_v21  ;;  %495 = vmatpush3.msra.mxu1 %v146_v26 }
  0x35   :  { %461 = vmatprep.subr.mxu0 %v646_v0  ;;  %496 = vmatprep.subr.mxu1 %v646_v0 }
  0x36   :  { %462 = vmatpush3.msra.mxu0 %v48_v23  ;;  %497 = vmatpush3.msra.mxu1 %v145_v28 }
  0x37   :  { %463 = vmatprep.subr.mxu0 %v646_v0  ;;  %498 = vmatprep.subr.mxu1 %v646_v0 }
  0x38   :  { %464 = vmatpush3.msra.mxu0 %v47_v25  ;;  %499 = vmatpush3.msra.mxu1 %v144_v31 }
  0x39   :  { %465 = vmatprep.subr.mxu0 %v646_v0  ;;  %500 = vmatprep.subr.mxu1 %v646_v0 }
  0x3a   :  { %466 = vmatpush3.msra.mxu0 %v46_v27  ;;  %501 = vmatpush3.msra.mxu1 %v143_v32 }
  0x3b   :  { %467 = vmatprep.subr.mxu0 %v646_v0  ;;  %502 = vmatprep.subr.mxu1 %v646_v0 }
  0x3c   :  { %468 = vmatpush3.msra.mxu0 %v45_v29  ;;  %503 = vmatpush3.msra.mxu1 %v142_v33 }
  0x3d   :  { %470 = vmatmul.mubr.f32.vlgmr.msra.gmra.mxu0 %v44_v30  ;;  %507 = vmatprep.subr.mxu0 %v646_v0 }
  0x3e   :  { %539 = vmatprep.mubr.msk.f32.mxu0 %vm647_vm0, %v646_v0  ;;  %508 = vmatpush3.msra.mxu0 %v257_v34 }
  0x3f   :  { %509 = vmatprep.subr.mxu0 %v646_v0 }
  0x40   :  { %510 = vmatpush3.msra.mxu0 %v256_v35 }
  0x41   :  { %511 = vmatprep.subr.mxu0 %v646_v0 }
  0x42   :  { %512 = vmatpush3.msra.mxu0 %v255_v36 }
  0x43   :  { %513 = vmatprep.subr.mxu0 %v646_v0 }
  0x44   :  { %514 = vmatpush3.msra.mxu0 %v254_v37 }
  0x45   :  { %515 = vmatprep.subr.mxu0 %v646_v0 }
  0x46   :  { %516 = vmatpush3.msra.mxu0 %v253_v38 }
  0x47   :  { %517 = vmatprep.subr.mxu0 %v646_v0 }
  0x48   :  { %518 = vmatpush3.msra.mxu0 %v252_v39 }
  0x49   :  { %519 = vmatprep.subr.mxu0 %v646_v0 }
  0x4a   :  { %520 = vmatpush3.msra.mxu0 %v251_v40 }
  0x4b   :  { %521 = vmatprep.subr.mxu0 %v646_v0 }
  0x4c   :  { %522 = vmatpush3.msra.mxu0 %v250_v41 }
  0x4d   :  { %523 = vmatprep.subr.mxu0 %v646_v0 }
  0x4e   :  { %524 = vmatpush3.msra.mxu0 %v249_v42 }
  0x4f   :  { %525 = vmatprep.subr.mxu0 %v646_v0 }
  0x50   :  { %526 = vmatpush3.msra.mxu0 %v248_v43 }
  0x51   :  { %527 = vmatprep.subr.mxu0 %v646_v0 }
  0x52   :  { %528 = vmatpush3.msra.mxu0 %v247_v44 }
  0x53   :  { %529 = vmatprep.subr.mxu0 %v646_v0 }
  0x54   :  { %530 = vmatpush3.msra.mxu0 %v246_v45 }
  0x55   :  { %531 = vmatprep.subr.mxu0 %v646_v0 }
  0x56   :  { %532 = vmatpush3.msra.mxu0 %v245_v46 }
  0x57   :  { %533 = vmatprep.subr.mxu0 %v646_v0 }
  0x58   :  { %534 = vmatpush3.msra.mxu0 %v244_v52 }
  0x59   :  { %535 = vmatprep.subr.mxu0 %v646_v0 }
  0x5a   :  { %536 = vmatpush3.msra.mxu0 %v243_v53 }
  0x5b   :  { %537 = vmatprep.subr.mxu0 %v646_v0 }
  0x5c   :  { %538 = vmatpush3.msra.mxu0 %v242_v54 }
  0xfd   :  { %v134_v48 = vpop.f32.mrf.mxu0 }
  0xfe   :  { %v135_v49 = vadd.f32 %v380_v47, %v134_v48 }
  0xff   :  { %v471_v50 = vpop.f32.mrf.mxu0 }
 0x100   :  { %138 = vst [vmem:[#allocation7] sm:$0xff] %v135_v49  ;;  %v139_v51 = vmax.f32 %v135_v49, 0.0 }
 0x102   :  { %140 = vst [vmem:[#allocation8] sm:$0xff] %v139_v51  ;;  %505 = vmatmul.mubr.f32.vlgmr.msra.gmra.mxu1 %v139_v51 }
 0x1c2   :  { %v232_v56 = vpop.f32.mrf.mxu1 }
 0x1c3   :  { %v233_v57 = vadd.f32 %v382_v55, %v232_v56 }
 0x1c4   :  { %v506_v58 = vpop.f32.mrf.mxu1 }
 0x1c5   :  { %237 = vst [vmem:[#allocation7 + $0x8] sm:$0xff] %v233_v57  ;;  %v238_v59 = vmax.f32 %v233_v57, 0.0 }
 0x1c7   :  { %240 = vst [vmem:[#allocation8 + $0x8] sm:$0xff] %v238_v59  ;;  %540 = vmatmul.mubr.f32.vlgmr.msra.gmra.mxu0 %v238_v59 }
 0x287   :  { %v332_v61 = vpop.f32.mrf.mxu0 }
 0x288   :  { %v333_v62 = vadd.f32 %v384_v60, %v332_v61 }
 0x289   :  { %v541_v63 = vpop.f32.mrf.mxu0 }
 0x28a   :  { %337 = vst [vmem:[#allocation7 + $0x10] sm:$0xff] %v333_v62  ;;  %v385_v0 = vmul.f32 -1.442695, %v333_v62 }
 0x28b   :  { %605 = shalt.err (!%p602_p0)
}
 0x28c   :  { %357 = dma.vmem_to_hbm [thread:$0]  %s352_s6, 384, %s762_s3, [#allocation4], %s644_s23, %s644_s23, %s645_s24   ;;  %550 = vpow2.f32 %v385_v0 }
 0x28d   :  { %s649_s9 = smov [#allocation8]  }
 0x28e   :  { %s363_s10 = sshll.u32 %s649_s9, 4  ;;  %s364_s10 = int_to_ptr.vmem [resolvable:$true] %s363_s10 }
 0x28f   :  { %s614_s11 = scalar_lea.vmem %s364_s10, 384  ;;  %p619_p2 = scmp.lt.s32.totalorder %s364_s10, %s364_s10 }
 0x290   :  { %p615_p1 = scmp.ne.s32.totalorder %s364_s10, %s614_s11  ;;  %p620_p3 = scmp.lt.s32.totalorder %s614_s11, %s614_s11 }
 0x292   :  { %p621_p4 = por %p620_p3, %p619_p2 }
 0x294   :  { %p622_p5 = pnand %p621_p4, %p615_p1 }
 0x299   :  { %v551_v1 = vpop.eup %550 }
 0x29a   :  { %v341_v2 = vadd.f32 1.0, %v551_v1 }
 0x29c   :  { %552 = vrcp.f32 %v341_v2 }
 0x2a9   :  { %v553_v3 = vpop.eup %552 }
 0x2aa   :  { %345 = vst [vmem:[#allocation8 + $0x10] sm:$0xff] %v553_v3 }
 0x2ab   :  { %625 = shalt.err (!%p622_p5)
}
 0x2ac   :  { %369 = dma.vmem_to_hbm [thread:$0]  %s364_s10, 384, %s763_s4, [#allocation9], %s644_s23, %s644_s23, %s645_s24  }
 0x2ad   :  { %638 = dma.done.wait [#allocation4], 384  }
 0x2ae   :  { %639 = vsyncadd [#allocation4], 4294966912 }
 0x2af   :  { %640 = dma.done.wait [#allocation9], 384  }
 0x2b0   :  { %641 = vsyncadd [#allocation9], 4294966912 }
 0x2b1   :  { %376 = vsyncpa [#allocation3], 1 }
 0x2b2   :  { %377 = vsyncpa [#allocation6], 1 }
 0x2b3   :  { %378 = vsyncpa [#allocation4], 1 }
 0x2b4   :  { %379 = vsyncpa [#allocation9], 1 }

</bundles_post_ra>
